<compile_context>
chip_gen: v6e
topology: v6e:2x2x1
jax: 0.10.0
libtpu: 0.0.40
codegen_flags: <defaults>
</compile_context>

<pallas_src>
import functools

import numpy as np
import jax
import jax.numpy as jnp
from jax.experimental import pallas as pl
from jax.experimental.pallas import tpu as pltpu


# ----------------------------------------------------------------------------
# Pallas kernel
# ----------------------------------------------------------------------------
def _down_block_kernel(x_ref, g_ref, o_ref, *, s2, wo):
    """One row-band of one batch element.

    x_ref: (1, TM, s*W)      packed rows: [in-row y*s+0 | in-row y*s+1 | ...]
    g_ref: (s*W, s*s*Wo)     constant 0/1 deinterleave matrix
    o_ref: (1, s*s, TM, Wo)  phase-major output band
    """
    out = jnp.dot(
        x_ref[0],
        g_ref[...],
        preferred_element_type=jnp.float32,
        precision=jax.lax.Precision.HIGHEST,
    )
    out = out.astype(o_ref.dtype)
    for m in range(s2):                      # s2 = scale**2, static tiny unroll
        o_ref[0, m, :, :] = out[:, m * wo:(m + 1) * wo]


# ----------------------------------------------------------------------------
# Wrapper
# ----------------------------------------------------------------------------
def down_block(x, scale):
    """Pixel-unshuffle identical to PyTorch DownBlock.forward (NCHW in/out)."""
    n, c, h, w = x.shape
    s = scale
    assert h % s == 0 and w % s == 0, (h, w, s)
    ho, wo = h // s, w // s
    rows = c * ho

    # FREE row-major reshape: (N, C, H, W) -> (N, C*Ho, s*W).
    # Row (c*Ho + y) now holds the s consecutive input rows of output row y,
    # concatenated along the lane axis.
    x2 = x.reshape(n, rows, s * w)

    # Constant 0/1 selection matrix.  Column (m*Wo + xx), with m = i*s + j,
    # picks packed-row element (i*W + xx*s + j)  ==  in[c, y*s+i, xx*s+j].
    g = np.zeros((s * w, s * s * wo), np.float32)
    for i in range(s):
        for j in range(s):
            m = i * s + j
            for xx in range(wo):
                g[i * w + xx * s + j, m * wo + xx] = 1.0
    g = jnp.asarray(g, dtype=x.dtype)

    # Row-band size (matmul M dim): largest multiple-of-8 divisor of `rows`
    # up to 2048 (sublane-aligned output blocks); fall back to the full extent.
    tm = rows
    if rows % 8 == 0:
        tm = 8
        for cand in range(8, min(rows, 2048) + 1, 8):
            if rows % cand == 0:
                tm = cand
    grid = (n, rows // tm)

    kernel = functools.partial(_down_block_kernel, s2=s * s, wo=wo)
    y = pl.pallas_call(
        kernel,
        out_shape=jax.ShapeDtypeStruct((n, s * s, rows, wo), x.dtype),
        grid_spec=pltpu.PrefetchScalarGridSpec(
            num_scalar_prefetch=0,
            grid=grid,
            in_specs=[
                pl.BlockSpec((1, tm, s * w), lambda b, t: (b, t, 0)),
                pl.BlockSpec((s * w, s * s * wo), lambda b, t: (0, 0)),
            ],
            out_specs=pl.BlockSpec((1, s * s, tm, wo), lambda b, t: (b, 0, t, 0)),
        ),
        compiler_params=pltpu.CompilerParams(
            dimension_semantics=("parallel", "parallel")),
    )(x2, g)

    # FREE row-major reshape back to NCHW: (N, s*s, C*Ho, Wo) -> (N, s*s*C, Ho, Wo).
    # Output channel index = (i*s + j)*C + c, matching permute(0, 3, 5, 1, 2, 4).
    return y.reshape(n, s * s * c, ho, wo)


# ----------------------------------------------------------------------------
# Pure-JAX reference (mirrors the PyTorch module exactly)
# ----------------------------------------------------------------------------
def down_block_reference(x, s):
    n, c, h, w = x.shape
    y = x.reshape(n, c, h // s, s, w // s, s)
    y = jnp.transpose(y, (0, 3, 5, 1, 2, 4))
    return y.reshape(n, c * s * s, h // s, w // s)


# ----------------------------------------------------------------------------
if __name__ == "__main__":
    # scale = 2, x: (N=2, C=4, H=16, W=16) NCHW, like PyTorch.
    key = jax.random.PRNGKey(0)
    x = jax.random.normal(key, (2, 4, 16, 16), jnp.float32)

    fwd = jax.jit(functools.partial(down_block, scale=2))
    y = fwd(x)
    jax.block_until_ready(y)

    y_ref = down_block_reference(x, 2)
    assert y.shape == (2, 16, 8, 8), y.shape
    assert bool(jnp.allclose(y, y_ref, atol=1e-5, rtol=1e-5)), \
        float(jnp.max(jnp.abs(y - y_ref)))

    # Second configuration: scale = 4, odd channel count (full-extent row band).
    x4 = jax.random.normal(jax.random.PRNGKey(0), (1, 3, 16, 16), jnp.float32)
    y4 = jax.jit(functools.partial(down_block, scale=4))(x4)
    jax.block_until_ready(y4)
    y4_ref = down_block_reference(x4, 4)
    assert y4.shape == (1, 48, 4, 4), y4.shape
    assert bool(jnp.allclose(y4, y4_ref, atol=1e-5, rtol=1e-5)), \
        float(jnp.max(jnp.abs(y4 - y4_ref)))

    print("KERNEL_OK")
</pallas_src>

<mosaic_0001>
module attributes {stable_mosaic.version = 11 : i64} {
  func.func @_down_block_kernel(%arg0: i32, %arg1: i32, %arg2: memref<1x32x32xf32, #tpu.memory_space<vmem>>, %arg3: memref<32x32xf32, #tpu.memory_space<vmem>>, %arg4: memref<1x4x32x8xf32, #tpu.memory_space<vmem>>) attributes {dimension_semantics = [#tpu.dimension_semantics<parallel>, #tpu.dimension_semantics<parallel>], iteration_bounds = array<i64: 2, 1>, scalar_prefetch = 0 : i64, scratch_operands = 0 : i64, tpu.core_type = #tpu.core_type<tc>, window_params = [{transform_indices = @transform_0, window_bounds = array<i64: 1, 32, 32>}, {pipeline_mode = #tpu.pipeline_mode<synchronous>, transform_indices = @transform_1, window_bounds = array<i64: 32, 32>}, {transform_indices = @transform_2, window_bounds = array<i64: 1, 4, 32, 8>}]} {
    %c0 = arith.constant 0 : index
    %c0_0 = arith.constant 0 : index
    %c0_1 = arith.constant 0 : index
    %0 = vector.load %arg2[%c0, %c0_0, %c0_1] : memref<1x32x32xf32, #tpu.memory_space<vmem>>, vector<1x32x32xf32>
    %1 = vector.shape_cast %0 : vector<1x32x32xf32> to vector<32x32xf32>
    %c0_2 = arith.constant 0 : index
    %c0_3 = arith.constant 0 : index
    %2 = vector.load %arg3[%c0_2, %c0_3] : memref<32x32xf32, #tpu.memory_space<vmem>>, vector<32x32xf32>
    %cst = arith.constant dense<0.000000e+00> : vector<32x32xf32>
    %3 = tpu.matmul %1, %2, %cst {dimension_numbers = #tpu.dot_dimension_numbers<[1], [0], [0], [1], [0, 0, 1, 1], [], []>, precision = #tpu.contract_precision<fp32>} : vector<32x32xf32>, vector<32x32xf32>, vector<32x32xf32> -> vector<32x32xf32>
    %4 = vector.extract_strided_slice %3 {offsets = [0, 0], sizes = [32, 8], strides = [1, 1]} : vector<32x32xf32> to vector<32x8xf32>
    %c0_4 = arith.constant 0 : index
    %c0_5 = arith.constant 0 : index
    %c0_6 = arith.constant 0 : index
    %c0_7 = arith.constant 0 : index
    %5 = vector.load %arg4[%c0_4, %c0_5, %c0_6, %c0_7] : memref<1x4x32x8xf32, #tpu.memory_space<vmem>>, vector<1x1x32x8xf32>
    %6 = vector.shape_cast %5 : vector<1x1x32x8xf32> to vector<32x8xf32>
    %7 = vector.shape_cast %4 : vector<32x8xf32> to vector<1x1x32x8xf32>
    tpu.vector_store %arg4[%c0_4, %c0_5, %c0_6, %c0_7], %7 {strides = array<i32>} : memref<1x4x32x8xf32, #tpu.memory_space<vmem>>, vector<1x1x32x8xf32>,
    %8 = vector.extract_strided_slice %3 {offsets = [0, 8], sizes = [32, 8], strides = [1, 1]} : vector<32x32xf32> to vector<32x8xf32>
    %c0_8 = arith.constant 0 : index
    %c1 = arith.constant 1 : index
    %c0_9 = arith.constant 0 : index
    %c0_10 = arith.constant 0 : index
    %9 = vector.load %arg4[%c0_8, %c1, %c0_9, %c0_10] : memref<1x4x32x8xf32, #tpu.memory_space<vmem>>, vector<1x1x32x8xf32>
    %10 = vector.shape_cast %9 : vector<1x1x32x8xf32> to vector<32x8xf32>
    %11 = vector.shape_cast %8 : vector<32x8xf32> to vector<1x1x32x8xf32>
    tpu.vector_store %arg4[%c0_8, %c1, %c0_9, %c0_10], %11 {strides = array<i32>} : memref<1x4x32x8xf32, #tpu.memory_space<vmem>>, vector<1x1x32x8xf32>,
    %12 = vector.extract_strided_slice %3 {offsets = [0, 16], sizes = [32, 8], strides = [1, 1]} : vector<32x32xf32> to vector<32x8xf32>
    %c0_11 = arith.constant 0 : index
    %c2 = arith.constant 2 : index
    %c0_12 = arith.constant 0 : index
    %c0_13 = arith.constant 0 : index
    %13 = vector.load %arg4[%c0_11, %c2, %c0_12, %c0_13] : memref<1x4x32x8xf32, #tpu.memory_space<vmem>>, vector<1x1x32x8xf32>
    %14 = vector.shape_cast %13 : vector<1x1x32x8xf32> to vector<32x8xf32>
    %15 = vector.shape_cast %12 : vector<32x8xf32> to vector<1x1x32x8xf32>
    tpu.vector_store %arg4[%c0_11, %c2, %c0_12, %c0_13], %15 {strides = array<i32>} : memref<1x4x32x8xf32, #tpu.memory_space<vmem>>, vector<1x1x32x8xf32>,
    %16 = vector.extract_strided_slice %3 {offsets = [0, 24], sizes = [32, 8], strides = [1, 1]} : vector<32x32xf32> to vector<32x8xf32>
    %c0_14 = arith.constant 0 : index
    %c3 = arith.constant 3 : index
    %c0_15 = arith.constant 0 : index
    %c0_16 = arith.constant 0 : index
    %17 = vector.load %arg4[%c0_14, %c3, %c0_15, %c0_16] : memref<1x4x32x8xf32, #tpu.memory_space<vmem>>, vector<1x1x32x8xf32>
    %18 = vector.shape_cast %17 : vector<1x1x32x8xf32> to vector<32x8xf32>
    %19 = vector.shape_cast %16 : vector<32x8xf32> to vector<1x1x32x8xf32>
    tpu.vector_store %arg4[%c0_14, %c3, %c0_15, %c0_16], %19 {strides = array<i32>} : memref<1x4x32x8xf32, #tpu.memory_space<vmem>>, vector<1x1x32x8xf32>,
    return
  }
  func.func @transform_0(%arg0: i32, %arg1: i32) -> (i32, i32, i32) {
    %c0_i32 = arith.constant 0 : i32
    %c0_i32_0 = arith.constant 0 : i32
    return %arg0, %arg1, %c0_i32 : i32, i32, i32
  }
  func.func @transform_1(%arg0: i32, %arg1: i32) -> (i32, i32) {
    %c0_i32 = arith.constant 0 : i32
    %c0_i32_0 = arith.constant 0 : i32
    %c0_i32_1 = arith.constant 0 : i32
    return %c0_i32, %c0_i32_0 : i32, i32
  }
  func.func @transform_2(%arg0: i32, %arg1: i32) -> (i32, i32, i32, i32) {
    %c0_i32 = arith.constant 0 : i32
    %c0_i32_0 = arith.constant 0 : i32
    %c0_i32_1 = arith.constant 0 : i32
    return %arg0, %c0_i32, %arg1, %c0_i32_0 : i32, i32, i32, i32
  }
}

</mosaic_0001>

<bundles_post_ra>
// kernel: down_block.1
= control target key start
LH: loop header
LB: loop body
LE: loop exit
PB: predicated region body
PF: predicated region fallthrough
CT: control target
= control target key end

     0   :  { %s1191_s9 = smov 0   ;;  %s1193_s10 = smov 0   ;;  %s1382_s0 = inlined_call_operand.vmem [shape: f32[2,32,32], index: 0, kind: input, shape index: {}]   ;;  %s1383_s1 = inlined_call_operand.vmem [shape: f32[32,32], index: 1, kind: input, shape index: {}]   ;;  %s1384_s2 = inlined_call_operand.vmem [shape: f32[2,4,32,8], index: 2, kind: output, shape index: {}]  }
   0x1   :  { %s1195_s11 = smov 0  }
   0x2 LB: > { %s24_s12 = sadd.s32 1, %s1167_s10  ;;  %p969_p0 = scmp.ge.s32.totalorder %s1171_s11, 1  ;;  %s1171_s11 = sphi %s1195_s11, %s12_s11   ;;  %s1167_s10 = sphi %s1193_s10, %s1386_s10   ;;  %s1163_s9 = sphi %s1191_s9, %s1385_s9  }
   0x3   : > { %p26_p1 = scmp.ge.s32.totalorder %s24_s12, 2  ;;  %p133_p2 = scmp.lt.s32.totalorder %s1171_s11, 3 }
   0x5   : > { %s1388_s12 = smov (%p26_p1, %s24_s12), 0  ;;  %p134_p3 = pnand %p969_p0, %p133_p2 }
   0x6   : > { %p164_p4 = scmp.lt.s32.totalorder (!%p134_p3), %s1163_s9, 1  ;;  %s1173_s29 = smov (!%p134_p3), 112  }
   0x7   : > { %137 = sbr.rel (%p134_p3) target bundleno = 386 (0x182), region = 28  ;;  %s1174_s30 = smov (!%p134_p3), 120  }
   0x8   : > { %s1175_s3 = smov (!%p134_p3), 104  }
   0xc   : > { %v190_v0 = vld [vmem:[%s1383_s1 + $0x18] sm:$0xff]  ;;  %v189_v1 = vld [vmem:[%s1383_s1 + $0x10] sm:$0xff]  ;;  %v188_v2 = vld [vmem:[%s1383_s1 + $0x8] sm:$0xff]  ;;  %s1390_s9 = smov (!%p164_p4, %s1163_s9), 1  ;;  %vm191_vm0 = vcmask 261120   ;;  %vm818_vm1 = vcmask 64512  }
   0xd   : > { %v1218_v3 = vand.u32 4294901760, %v190_v0  ;;  %v1220_v4 = vand.u32 4294901760, %v189_v1  ;;  %v1222_v5 = vand.u32 4294901760, %v188_v2  ;;  %v187_v6 = vld [vmem:[%s1383_s1] sm:$0xff]  ;;  %s988_s21 = sshll.u32 %s1390_s9, 5  ;;  %s989_s25 = sshll.u32 %s1390_s9, 7 }
   0xe   : > { %v1227_v7 = vand.u32 4294901760, %v187_v6  ;;  %s171_s24 = scalar_lea.vmem %s1382_s0, %s988_s21  ;;  %s1339_s28 = scalar_lea.vmem %s1384_s2, %s989_s25 }
   0xf   : > { %1038 = vmatprep.subr.mxu0 %v1218_v3  ;;  %v1233_v8 = vsub.f32 %v190_v0, %v1218_v3  ;;  %v1236_v9 = vsub.f32 %v189_v1, %v1220_v4  ;;  %v1239_v10 = vsub.f32 %v188_v2, %v1222_v5  ;;  %v183_v16 = vld [vmem:[%s171_s24] sm:$0xff]  ;;  %v184_v17 = vld [vmem:[%s171_s24 + $0x8] sm:$0xff]  ;;  %v185_v18 = vld [vmem:[%s171_s24 + $0x10] sm:$0xff] }
  0x10   : > { %1039 = vmatpush3.msra.mxu0 %v1218_v3  ;;  %v1243_v11 = vsub.f32 %v187_v6, %v1227_v7  ;;  %v193_v22 = vsel %vm191_vm0, %v183_v16, 0  ;;  %v186_v23 = vld [vmem:[%s171_s24 + $0x18] sm:$0xff]  ;;  %v196_v25 = vsel %vm191_vm0, %v184_v17, 0  ;;  %v199_v26 = vsel %vm191_vm0, %v185_v18, 0 }
  0x11   : > { %v1247_v12 = vand.u32 4294901760, %v1233_v8  ;;  %1040 = vmatprep.subr.mxu0 %v1220_v4  ;;  %v1251_v13 = vand.u32 4294901760, %v1236_v9  ;;  %v1254_v14 = vand.u32 4294901760, %v1239_v10  ;;  %v1272_v24 = vand.u32 4294901760, %v193_v22 }
  0x12   : > { %1041 = vmatpush3.msra.mxu0 %v1220_v4  ;;  %v1261_v15 = vand.u32 4294901760, %v1243_v11  ;;  %v1279_v30 = vand.u32 4294901760, %v196_v25  ;;  %v1284_v32 = vand.u32 4294901760, %v199_v26  ;;  %v202_v33 = vsel %vm191_vm0, %v186_v23, 0 }
  0x13   : > { %v341_v19 = vsub.f32 %v1233_v8, %v1247_v12  ;;  %v348_v20 = vsub.f32 %v1236_v9, %v1251_v13  ;;  %1042 = vmatprep.subr.mxu0 %v1222_v5  ;;  %v355_v21 = vsub.f32 %v1239_v10, %v1254_v14  ;;  %v274_v31 = vsub.f32 %v193_v22, %v1272_v24 }
  0x14   : > { %1043 = vmatpush3.msra.mxu0 %v1222_v5  ;;  %v362_v29 = vsub.f32 %v1243_v11, %v1261_v15  ;;  %1060 = vmatprep.mubr.f32.mxu1 %v1272_v24  ;;  %v284_v35 = vsub.f32 %v196_v25, %v1279_v30  ;;  %v1289_v36 = vand.u32 4294901760, %v202_v33  ;;  %v294_v38 = vsub.f32 %v199_v26, %v1284_v32 }
  0x15   : > { %v342_v27 = vand.u32 4294901760, %v341_v19  ;;  %v349_v28 = vand.u32 4294901760, %v348_v20  ;;  %1044 = vmatprep.subr.mxu0 %v1227_v7  ;;  %v356_v34 = vand.u32 4294901760, %v355_v21  ;;  %v275_v37 = vand.u32 4294901760, %v274_v31 }
  0x16   : > { %1045 = vmatpush3.msra.mxu0 %v1227_v7  ;;  %v363_v39 = vand.u32 4294901760, %v362_v29  ;;  %v285_v40 = vand.u32 4294901760, %v284_v35  ;;  %v304_v41 = vsub.f32 %v202_v33, %v1289_v36  ;;  %v295_v43 = vand.u32 4294901760, %v294_v38 }
  0x17   : > { %1052 = vmatprep.subr.mxu1 %v342_v27  ;;  %1066 = vmatprep.subr.mxu0 %v1233_v8  ;;  %v276_v42 = vsub.f32 %v274_v31, %v275_v37 }
  0x18   : > { %1053 = vmatpush3.msra.mxu1 %v342_v27  ;;  %v286_v44 = vsub.f32 %v284_v35, %v285_v40  ;;  %v305_v45 = vand.u32 4294901760, %v304_v41  ;;  %v296_v47 = vsub.f32 %v294_v38, %v295_v43 }
  0x19   : > { %1054 = vmatprep.subr.mxu1 %v349_v28  ;;  %v277_v46 = vand.u32 4294901760, %v276_v42 }
  0x1a   : > { %1055 = vmatpush3.msra.mxu1 %v349_v28  ;;  %v287_v48 = vand.u32 4294901760, %v286_v44  ;;  %v306_v49 = vsub.f32 %v304_v41, %v305_v45  ;;  %v297_v50 = vand.u32 4294901760, %v296_v47 }
  0x1b   : > { %1056 = vmatprep.subr.mxu1 %v356_v34  ;;  %1046 = vmatprep.mubr.f32.mxu0 %v277_v46 }
  0x1c   : > { %1057 = vmatpush3.msra.mxu1 %v356_v34  ;;  %1047 = vmatmul.mubr.f32.vlgmr.msra.gmra.mxu0 %v287_v48  ;;  %v307_v51 = vand.u32 4294901760, %v306_v49 }
  0x1d   : > { %1058 = vmatprep.subr.mxu1 %v363_v39  ;;  %1067 = vmatpush3.msra.mxu0 %v1233_v8 }
  0x1e   : > { %1059 = vmatpush3.msra.mxu1 %v363_v39  ;;  %1068 = vmatprep.subr.mxu0 %v1236_v9 }
  0x1f   : > { %1061 = vmatmul.mubr.f32.vlgmr.msra.gmra.mxu1 %v1279_v30  ;;  %1080 = vmatprep.subr.mxu1 %v1218_v3 }
  0x20   : > { %1081 = vmatpush3.msra.mxu1 %v1218_v3  ;;  %1069 = vmatpush3.msra.mxu0 %v1236_v9 }
  0x21   : > { %1082 = vmatprep.subr.mxu1 %v1220_v4  ;;  %1049 = vmatprep.mubr.f32.mxu0 %v297_v50 }
  0x22   : > { %1063 = vmatprep.mubr.f32.mxu1 %v1284_v32  ;;  %1070 = vmatprep.subr.mxu0 %v1239_v10 }
  0x23   : > { %1083 = vmatpush3.msra.mxu1 %v1220_v4  ;;  %1050 = vmatmul.mubr.f32.gmra.mxu0 %v307_v51 }
  0x24   : > { %1064 = vmatmul.mubr.f32.gmra.mxu1 %v1289_v36  ;;  %1071 = vmatpush3.msra.mxu0 %v1239_v10 }
  0x25   : > { %1084 = vmatprep.subr.mxu1 %v1222_v5  ;;  %1072 = vmatprep.subr.mxu0 %v1243_v11 }
  0x26   : > { %1085 = vmatpush3.msra.mxu1 %v1222_v5  ;;  %1073 = vmatpush3.msra.mxu0 %v1243_v11 }
  0x27   : > { %1086 = vmatprep.subr.mxu1 %v1227_v7  ;;  %1074 = vmatprep.mubr.f32.mxu0 %v274_v31 }
  0x28   : > { %1087 = vmatpush3.msra.mxu1 %v1227_v7  ;;  %1088 = vmatprep.mubr.f32.mxu1 %v275_v37 }
  0x29   : > { %1094 = vmatprep.subr.mxu0 %v1247_v12  ;;  %1075 = vmatmul.mubr.f32.vlgmr.msra.gmra.mxu0 %v284_v35 }
  0x2a   : > { %1089 = vmatmul.mubr.f32.vlgmr.msra.gmra.mxu1 %v285_v40  ;;  %1095 = vmatpush3.msra.mxu0 %v1247_v12 }
  0x2b   : > { %1108 = vmatprep.subr.mxu1 %v1218_v3  ;;  %1096 = vmatprep.subr.mxu0 %v1251_v13 }
  0x2c   : > { %1109 = vmatpush3.msra.mxu1 %v1218_v3  ;;  %1097 = vmatpush3.msra.mxu0 %v1251_v13 }
  0x2d   : > { %1110 = vmatprep.subr.mxu1 %v1220_v4  ;;  %1077 = vmatprep.mubr.f32.mxu0 %v294_v38 }
  0x2e   : > { %1091 = vmatprep.mubr.f32.mxu1 %v295_v43  ;;  %1098 = vmatprep.subr.mxu0 %v1254_v14 }
  0x2f   : > { %1111 = vmatpush3.msra.mxu1 %v1220_v4  ;;  %1078 = vmatmul.mubr.f32.gmra.mxu0 %v304_v41 }
  0x30   : > { %1092 = vmatmul.mubr.f32.gmra.mxu1 %v305_v45  ;;  %1099 = vmatpush3.msra.mxu0 %v1254_v14 }
  0x31   : > { %1112 = vmatprep.subr.mxu1 %v1222_v5  ;;  %1100 = vmatprep.subr.mxu0 %v1261_v15 }
  0x32   : > { %1113 = vmatpush3.msra.mxu1 %v1222_v5  ;;  %1101 = vmatpush3.msra.mxu0 %v1261_v15 }
  0x33   : > { %1114 = vmatprep.subr.mxu1 %v1227_v7  ;;  %1102 = vmatprep.mubr.f32.mxu0 %v1272_v24 }
  0x34   : > { %1115 = vmatpush3.msra.mxu1 %v1227_v7  ;;  %1116 = vmatprep.mubr.f32.mxu1 %v1272_v24 }
  0x35   : > { %1103 = vmatmul.mubr.f32.vlgmr.msra.gmra.mxu0 %v1279_v30  ;;  %1117 = vmatmul.mubr.f32.vlgmr.msra.gmra.mxu1 %v1279_v30 }
  0x36   : > { %1105 = vmatprep.mubr.f32.mxu0 %v1284_v32  ;;  %1119 = vmatprep.mubr.f32.mxu1 %v1284_v32 }
  0x39   : > { %1106 = vmatmul.mubr.f32.gmra.mxu0 %v1289_v36  ;;  %1120 = vmatmul.mubr.f32.gmra.mxu1 %v1289_v36 }
  0xdc   : > { %v1048_v52 = vpop.f32.mrf.mxu0 }
  0xde   : > { %v279_v54 = vpop.f32.mrf.mxu0 }
  0xdf   : > { %v1062_v53 = vpop.f32.mrf.mxu1 }
  0xe0   : > { %v407_v0 = vadd.f32 %v1062_v53, %v1048_v52 }
  0xe1   : > { %v400_v55 = vpop.f32.mrf.mxu1 }
  0xe2   : > { %v401_v1 = vadd.f32 %v400_v55, %v279_v54 }
  0xe3   : > { %v1051_v56 = vpop.f32.mrf.mxu0 }
  0xe4   : > { %v1065_v57 = vpop.f32.mrf.mxu1 }
  0xe5   : > { %v299_v58 = vpop.f32.mrf.mxu0  ;;  %v419_v5 = vadd.f32 %v1065_v57, %v1051_v56 }
  0xe6   : > { %v412_v59 = vpop.f32.mrf.mxu1 }
  0xe7   : > { %v413_v9 = vadd.f32 %v412_v59, %v299_v58 }
  0xe9   : > { %v1076_v60 = vpop.f32.mrf.mxu0 }
  0xea   : > { %v1090_v61 = vpop.f32.mrf.mxu1  ;;  %v506_v2 = vadd.f32 %v1076_v60, %v407_v0 }
  0xeb   : > { %v498_v62 = vpop.f32.mrf.mxu0 }
  0xec   : > { %v596_v63 = vpop.f32.mrf.mxu1  ;;  %v499_v6 = vadd.f32 %v498_v62, %v401_v1  ;;  %v605_v10 = vadd.f32 %v1090_v61, %v506_v2 }
  0xee   : > { %v597_v13 = vadd.f32 %v596_v63, %v499_v6 }
  0xef   : > { %v1079_v3 = vpop.f32.mrf.mxu0 }
  0xf0   : > { %v1093_v4 = vpop.f32.mrf.mxu1  ;;  %v520_v11 = vadd.f32 %v1079_v3, %v419_v5 }
  0xf1   : > { %v512_v7 = vpop.f32.mrf.mxu0 }
  0xf2   : > { %v612_v8 = vpop.f32.mrf.mxu1  ;;  %v513_v14 = vadd.f32 %v512_v7, %v413_v9  ;;  %v621_v18 = vadd.f32 %v1093_v4, %v520_v11 }
  0xf4   : > { %v613_v23 = vadd.f32 %v612_v8, %v513_v14 }
  0xf5   : > { %v1104_v12 = vpop.f32.mrf.mxu0  ;;  %v1118_v16 = vpop.f32.mrf.mxu1 }
  0xf6   : > { %v710_v15 = vadd.f32 %v1104_v12, %v605_v10 }
  0xf7   : > { %v703_v17 = vpop.f32.mrf.mxu0  ;;  %v796_v21 = vpop.f32.mrf.mxu1 }
  0xf8   : > { %v803_v19 = vadd.f32 %v1118_v16, %v710_v15  ;;  %v704_v20 = vadd.f32 %v703_v17, %v597_v13 }
  0xf9   : > { %v1107_v22 = vpop.f32.mrf.mxu0  ;;  %v1121_v26 = vpop.f32.mrf.mxu1 }
  0xfa   : > { %820 = vst.msk [vmem:[%s1339_s28 + $0x8] sm:$0xff] %vm818_vm1, %v803_v19  ;;  %v797_v24 = vadd.f32 %v796_v21, %v704_v20  ;;  %v722_v25 = vadd.f32 %v1107_v22, %v621_v18  ;;  %846 = vrot.lane.b32.xlu1 %v803_v19, %s1173_s29  ;;  %829 = vrot.lane.b32.xlu0 %v803_v19, %s1174_s30 }
  0xfb   : > { %v715_v27 = vpop.f32.mrf.mxu0  ;;  %v808_v30 = vpop.f32.mrf.mxu1 }
  0xfc   : > { %819 = vst.msk [vmem:[%s1339_s28] sm:$0xff] %vm818_vm1, %v797_v24  ;;  %v716_v28 = vadd.f32 %v715_v27, %v613_v23  ;;  %v815_v29 = vadd.f32 %v1121_v26, %v722_v25 }
  0xfe   : > { %822 = vst.msk [vmem:[%s1339_s28 + $0x18] sm:$0xff] %vm818_vm1, %v815_v29  ;;  %v809_v31 = vadd.f32 %v808_v30, %v716_v28  ;;  %863 = vrot.lane.b32.xlu1 %v803_v19, %s1175_s3  ;;  %827 = vrot.lane.b32.xlu0 %v797_v24, %s1174_s30 }
 0x100   : > { %821 = vst.msk [vmem:[%s1339_s28 + $0x10] sm:$0xff] %vm818_vm1, %v809_v31 }
 0x102   : > { %833 = vrot.lane.b32.xlu1 %v815_v29, %s1174_s30  ;;  %844 = vrot.lane.b32.xlu0 %v797_v24, %s1173_s29 }
 0x106   : > { %850 = vrot.lane.b32.xlu1 %v815_v29, %s1173_s29  ;;  %861 = vrot.lane.b32.xlu0 %v797_v24, %s1175_s3 }
 0x10a   : > { %848 = vrot.lane.b32.xlu0 %v809_v31, %s1173_s29  ;;  %831 = vrot.lane.b32.xlu1 %v809_v31, %s1174_s30 }
 0x10e   : > { %865 = vrot.lane.b32.xlu0 %v809_v31, %s1175_s3  ;;  %867 = vrot.lane.b32.xlu1 %v815_v29, %s1175_s3 }
 0x16c   : > { %v847_v32 = vpop.permute.xlu1 %846  ;;  %v830_v33 = vpop.permute.xlu0 %829 }
 0x16d   : > { %979 = vst.msk [vmem:[%s1339_s28 + $0x48] sm:$0xff] %vm818_vm1, %v847_v32  ;;  %975 = vst.msk [vmem:[%s1339_s28 + $0x28] sm:$0xff] %vm818_vm1, %v830_v33 }
 0x170   : > { %v864_v34 = vpop.permute.xlu1 %863  ;;  %v828_v35 = vpop.permute.xlu0 %827 }
 0x171   : > { %983 = vst.msk [vmem:[%s1339_s28 + $0x68] sm:$0xff] %vm818_vm1, %v864_v34  ;;  %974 = vst.msk [vmem:[%s1339_s28 + $0x20] sm:$0xff] %vm818_vm1, %v828_v35 }
 0x174   : > { %v834_v36 = vpop.permute.xlu1 %833  ;;  %v845_v37 = vpop.permute.xlu0 %844 }
 0x175   : > { %977 = vst.msk [vmem:[%s1339_s28 + $0x38] sm:$0xff] %vm818_vm1, %v834_v36  ;;  %978 = vst.msk [vmem:[%s1339_s28 + $0x40] sm:$0xff] %vm818_vm1, %v845_v37 }
 0x178   : > { %v851_v38 = vpop.permute.xlu1 %850  ;;  %v862_v39 = vpop.permute.xlu0 %861 }
 0x179   : > { %981 = vst.msk [vmem:[%s1339_s28 + $0x58] sm:$0xff] %vm818_vm1, %v851_v38  ;;  %982 = vst.msk [vmem:[%s1339_s28 + $0x60] sm:$0xff] %vm818_vm1, %v862_v39 }
 0x17c   : > { %v849_v40 = vpop.permute.xlu0 %848  ;;  %v832_v41 = vpop.permute.xlu1 %831 }
 0x17d   : > { %980 = vst.msk [vmem:[%s1339_s28 + $0x50] sm:$0xff] %vm818_vm1, %v849_v40  ;;  %976 = vst.msk [vmem:[%s1339_s28 + $0x30] sm:$0xff] %vm818_vm1, %v832_v41 }
 0x180   : > { %v866_v42 = vpop.permute.xlu0 %865  ;;  %v868_v43 = vpop.permute.xlu1 %867 }
 0x181   : > { %984 = vst.msk [vmem:[%s1339_s28 + $0x70] sm:$0xff] %vm818_vm1, %v866_v42  ;;  %985 = vst.msk [vmem:[%s1339_s28 + $0x78] sm:$0xff] %vm818_vm1, %v868_v43 }
 0x182 PF: > { %s12_s11 = sadd.s32 1, %s1171_s11   ;;  %s1385_s9 = smov %s1167_s10 }
 0x183   : > { %p9_p5 = scmp.ge.s32.totalorder %s12_s11, 4   ;;  %s1386_s10 = smov %s1388_s12 }
 0x185   :  { %11 = sbr.rel (!%p9_p5) target bundleno = 2 (0x2), region = 61 }

</bundles_post_ra>
